<compile_context>
chip_gen: v6e
topology: v6e:2x2x1
jax: 0.10.0
libtpu: 0.0.40
codegen_flags: <defaults>
</compile_context>

<pallas_src>
import jax
import jax.numpy as jnp
import numpy as np
from jax.experimental import pallas as pl
from jax.experimental.pallas import tpu as pltpu


# ---------------------------------------------------------------------------
# Fused kernel: channel-max + Conv3d (as shifted matmuls) + bias + sigmoid(x)*x
# One grid step == one (batch, output-time) plane.
# ---------------------------------------------------------------------------
def _make_fused_conv_kernel(KT, KH, KW, C, Cout, Wp, Q):
    def kernel(x_ref, wx_ref, wm_ref, b_ref, o_ref):
        # x_ref block: (1, KT, C, Hp*Wp)  -- padded x plane(s), spatial flattened on lanes.
        xb = x_ref[0]                                      # (KT, C, Hp*Wp) f32
        # channel max over the C real channels (padded spatial positions are 0 -> consistent
        # with zero-padding the max map, since max over zeros is 0 there).
        mx = jnp.max(xb, axis=1, keepdims=True)            # (KT, 1, Hp*Wp)

        acc = jnp.zeros((Cout, Q), jnp.float32)
        tap = 0
        for kt in range(KT):
            for kh in range(KH):
                for kw in range(KW):
                    off = kh * Wp + kw                     # flat shift of this tap
                    xs = xb[kt, :, off:off + Q]            # (C, Q) contiguous lane slice
                    ms = mx[kt, :, off:off + Q]            # (1, Q)
                    # x-channel contribution (avg branch already folded into wx)
                    acc = acc + jnp.dot(wx_ref[tap], xs,
                                        preferred_element_type=jnp.float32)
                    # max-channel contribution: (Cout,1) * (1,Q) broadcast FMA on the VPU
                    acc = acc + wm_ref[tap] * ms
                    tap += 1

        acc = acc + b_ref[...]                             # (Cout,1) broadcast bias
        o_ref[0] = (jax.nn.sigmoid(acc) * acc).astype(o_ref.dtype)

    return kernel


# ---------------------------------------------------------------------------
# Full SpatialAttention forward (NCDHW in / NCDHW out, matches the PyTorch module)
# ---------------------------------------------------------------------------
def spatial_attention_forward(x, weight, bias, stride, padding):
    N, C, T, H, W = x.shape
    Cout, Cin, KT, KH, KW = weight.shape                   # Cin = C + 2 (avg, max, x...)
    assert Cin == C + 2
    st, sh, sw = stride
    pt, ph, pw = padding

    Tp, Hp, Wp = T + 2 * pt, H + 2 * ph, W + 2 * pw
    To = (Tp - KT) // st + 1
    Ho1, Wo1 = Hp - KH + 1, Wp - KW + 1                    # stride-1 spatial output extents
    n_taps = KT * KH * KW
    HWp = Hp * Wp
    Q = Ho1 * Wp - (KW - 1)                                # flat-q extent computed per plane
    P = N * To

    f32 = jnp.float32
    w = weight.astype(f32)
    # Fold the channel-mean branch into the x-channel weights (mean over C is linear):
    #   avg-channel weight w[:, 0] contributes w[:, 0] / C to every x channel.
    w_x = w[:, 2:] + w[:, :1] / C                          # (Cout, C, KT, KH, KW)
    w_mx = w[:, 1]                                         # (Cout, KT, KH, KW)
    wx_t = w_x.transpose(2, 3, 4, 0, 1).reshape(n_taps, Cout, C)
    wm_t = w_mx.transpose(1, 2, 3, 0).reshape(n_taps, Cout, 1)
    b2 = bias.astype(f32).reshape(Cout, 1)

    # Zero-pad x once (conv padding); gather temporal windows (no-op for KT=1, st=1);
    # layout as one (KT, C, Hp*Wp) plane per (batch, t_out) row.
    xp_ = jnp.pad(x.astype(f32), ((0, 0), (0, 0), (pt, pt), (ph, ph), (pw, pw)))
    xw = jnp.stack([xp_[:, :, kt:kt + st * (To - 1) + 1:st] for kt in range(KT)], axis=2)
    xw = xw.transpose(0, 3, 2, 1, 4, 5).reshape(P, KT, C, HWp)   # (N*To, KT, C, Hp*Wp)

    kernel = _make_fused_conv_kernel(KT, KH, KW, C, Cout, Wp, Q)

    flops = int(2 * P * n_taps * Cout * (C + 1) * Q)
    bytes_accessed = int(4 * (xw.size + wx_t.size + wm_t.size + P * Cout * Q))

    out_big = pl.pallas_call(
        kernel,
        out_shape=jax.ShapeDtypeStruct((P, Cout, Q), xw.dtype),
        grid=(P,),
        in_specs=[
            pl.BlockSpec((1, KT, C, HWp), lambda i: (i, 0, 0, 0)),
            pl.BlockSpec((n_taps, Cout, C), lambda i: (0, 0, 0)),
            pl.BlockSpec((n_taps, Cout, 1), lambda i: (0, 0, 0)),
            pl.BlockSpec((Cout, 1), lambda i: (0, 0)),
        ],
        out_specs=pl.BlockSpec((1, Cout, Q), lambda i: (i, 0, 0)),
        compiler_params=pltpu.CompilerParams(dimension_semantics=("parallel",)),
        cost_estimate=pl.CostEstimate(flops=flops,
                                      transcendentals=int(P * Cout * Q),
                                      bytes_accessed=bytes_accessed),
    )(xw, wx_t, wm_t, b2)

    # (P, Cout, Q) -> (N, Cout, To, Ho, Wo): un-flatten the padded-width q coordinate,
    # drop the KW-1 wrap columns, apply the spatial stride, go back to NCDHW.
    if KW > 1:
        out_big = jnp.pad(out_big, ((0, 0), (0, 0), (0, KW - 1)))
    out = out_big.reshape(N, To, Cout, Ho1, Wp)[..., :Wo1]
    if sh > 1 or sw > 1:
        out = out[:, :, :, ::sh, ::sw]
    return out.transpose(0, 2, 1, 3, 4)


# ---------------------------------------------------------------------------
# Pure-JAX reference (correctness assert)
# ---------------------------------------------------------------------------
def _ref_forward(x, weight, bias, stride, padding):
    avg = jnp.mean(x, axis=1, keepdims=True)
    mx = jnp.max(x, axis=1, keepdims=True)
    xin = jnp.concatenate([avg, mx, x], axis=1)
    y = jax.lax.conv_general_dilated(
        xin, weight, window_strides=stride,
        padding=[(p, p) for p in padding],
        dimension_numbers=("NCDHW", "OIDHW", "NCDHW"))
    y = y + bias.reshape(1, -1, 1, 1, 1)
    return jax.nn.sigmoid(y) * y


if __name__ == "__main__":
    key = jax.random.PRNGKey(0)
    kx, kw_, kb = jax.random.split(key, 3)

    # SpatioTemporalConv constructs SpatialAttention with a *spatial* kernel:
    # kernel (1, kh, kw), stride (1, sh, sw), padding (0, ph, pw).
    N, C, T, H, W = 2, 4, 4, 16, 16
    out_channels = 8
    kernel_size = (1, 3, 3)
    stride = (1, 1, 1)
    padding = (0, 1, 1)

    Cin = C + 2
    fan_in = Cin * kernel_size[0] * kernel_size[1] * kernel_size[2]
    bound = 1.0 / float(np.sqrt(fan_in))       # PyTorch Conv3d default init bounds

    x = jax.random.normal(kx, (N, C, T, H, W), jnp.float32)
    weight = jax.random.uniform(kw_, (out_channels, Cin) + kernel_size,
                                jnp.float32, -bound, bound)
    bias = jax.random.uniform(kb, (out_channels,), jnp.float32, -bound, bound)

    fwd = jax.jit(spatial_attention_forward, static_argnums=(3, 4))
    out = fwd(x, weight, bias, stride, padding)
    out = jax.block_until_ready(out)

    ref = _ref_forward(x, weight, bias, stride, padding)
    np.testing.assert_allclose(np.asarray(out), np.asarray(ref), atol=1e-4, rtol=1e-4)

    print("KERNEL_OK")
</pallas_src>

<mosaic_0001>
module attributes {stable_mosaic.version = 11 : i64} {
  func.func @kernel(%arg0: i32, %arg1: memref<1x1x4x324xf32, #tpu.memory_space<vmem>>, %arg2: memref<9x8x4xf32, #tpu.memory_space<vmem>>, %arg3: memref<9x8x1xf32, #tpu.memory_space<vmem>>, %arg4: memref<8x1xf32, #tpu.memory_space<vmem>>, %arg5: memref<1x8x286xf32, #tpu.memory_space<vmem>>) attributes {dimension_semantics = [#tpu.dimension_semantics<parallel>], iteration_bounds = array<i64: 8>, scalar_prefetch = 0 : i64, scratch_operands = 0 : i64, tpu.core_type = #tpu.core_type<tc>, window_params = [{transform_indices = @transform_0, window_bounds = array<i64: 1, 1, 4, 324>}, {pipeline_mode = #tpu.pipeline_mode<synchronous>, transform_indices = @transform_1, window_bounds = array<i64: 9, 8, 4>}, {pipeline_mode = #tpu.pipeline_mode<synchronous>, transform_indices = @transform_2, window_bounds = array<i64: 9, 8, 1>}, {pipeline_mode = #tpu.pipeline_mode<synchronous>, transform_indices = @transform_3, window_bounds = array<i64: 8, 1>}, {transform_indices = @transform_4, window_bounds = array<i64: 1, 8, 286>}]} {
    %c0 = arith.constant 0 : index
    %c0_0 = arith.constant 0 : index
    %c0_1 = arith.constant 0 : index
    %c0_2 = arith.constant 0 : index
    %0 = vector.load %arg1[%c0, %c0_0, %c0_1, %c0_2] : memref<1x1x4x324xf32, #tpu.memory_space<vmem>>, vector<1x1x4x324xf32>
    %1 = vector.shape_cast %0 : vector<1x1x4x324xf32> to vector<1x4x324xf32>
    %cst = arith.constant dense<0xFF800000> : vector<1x324xf32>
    %2 = vector.multi_reduction <maximumf>, %1, %cst [1] : vector<1x4x324xf32> to vector<1x324xf32>
    %3 = vector.shape_cast %2 : vector<1x324xf32> to vector<1x1x324xf32>
    %cst_3 = arith.constant 0.000000e+00 : f32
    %4 = vector.broadcast %cst_3 : f32 to vector<8x286xf32>
    %5 = vector.extract_strided_slice %1 {offsets = [0, 0, 0], sizes = [1, 4, 286], strides = [1, 1, 1]} : vector<1x4x324xf32> to vector<1x4x286xf32>
    %6 = vector.shape_cast %5 : vector<1x4x286xf32> to vector<4x286xf32>
    %7 = vector.extract_strided_slice %3 {offsets = [0, 0, 0], sizes = [1, 1, 286], strides = [1, 1, 1]} : vector<1x1x324xf32> to vector<1x1x286xf32>
    %8 = vector.shape_cast %7 : vector<1x1x286xf32> to vector<1x286xf32>
    %c0_4 = arith.constant 0 : index
    %c0_5 = arith.constant 0 : index
    %c0_6 = arith.constant 0 : index
    %9 = vector.load %arg2[%c0_4, %c0_5, %c0_6] : memref<9x8x4xf32, #tpu.memory_space<vmem>>, vector<1x8x4xf32>
    %10 = vector.shape_cast %9 : vector<1x8x4xf32> to vector<8x4xf32>
    %cst_7 = arith.constant dense<0.000000e+00> : vector<8x286xf32>
    %11 = tpu.matmul %10, %6, %cst_7 {dimension_numbers = #tpu.dot_dimension_numbers<[1], [0], [0], [1], [0, 0, 1, 1], [], []>} : vector<8x4xf32>, vector<4x286xf32>, vector<8x286xf32> -> vector<8x286xf32>
    %12 = arith.addf %4, %11 : vector<8x286xf32>
    %c0_8 = arith.constant 0 : index
    %c0_9 = arith.constant 0 : index
    %c0_10 = arith.constant 0 : index
    %13 = vector.load %arg3[%c0_8, %c0_9, %c0_10] : memref<9x8x1xf32, #tpu.memory_space<vmem>>, vector<1x8x1xf32>
    %14 = vector.shape_cast %13 : vector<1x8x1xf32> to vector<8x1xf32>
    %15 = vector.broadcast %14 : vector<8x1xf32> to vector<8x286xf32>
    %16 = vector.broadcast %8 : vector<1x286xf32> to vector<8x286xf32>
    %17 = arith.mulf %15, %16 : vector<8x286xf32>
    %18 = arith.addf %12, %17 : vector<8x286xf32>
    %19 = vector.extract_strided_slice %1 {offsets = [0, 0, 1], sizes = [1, 4, 286], strides = [1, 1, 1]} : vector<1x4x324xf32> to vector<1x4x286xf32>
    %20 = vector.shape_cast %19 : vector<1x4x286xf32> to vector<4x286xf32>
    %21 = vector.extract_strided_slice %3 {offsets = [0, 0, 1], sizes = [1, 1, 286], strides = [1, 1, 1]} : vector<1x1x324xf32> to vector<1x1x286xf32>
    %22 = vector.shape_cast %21 : vector<1x1x286xf32> to vector<1x286xf32>
    %c1 = arith.constant 1 : index
    %c0_11 = arith.constant 0 : index
    %c0_12 = arith.constant 0 : index
    %23 = vector.load %arg2[%c1, %c0_11, %c0_12] : memref<9x8x4xf32, #tpu.memory_space<vmem>>, vector<1x8x4xf32>
    %24 = vector.shape_cast %23 : vector<1x8x4xf32> to vector<8x4xf32>
    %cst_13 = arith.constant dense<0.000000e+00> : vector<8x286xf32>
    %25 = tpu.matmul %24, %20, %cst_13 {dimension_numbers = #tpu.dot_dimension_numbers<[1], [0], [0], [1], [0, 0, 1, 1], [], []>} : vector<8x4xf32>, vector<4x286xf32>, vector<8x286xf32> -> vector<8x286xf32>
    %26 = arith.addf %18, %25 : vector<8x286xf32>
    %c1_14 = arith.constant 1 : index
    %c0_15 = arith.constant 0 : index
    %c0_16 = arith.constant 0 : index
    %27 = vector.load %arg3[%c1_14, %c0_15, %c0_16] : memref<9x8x1xf32, #tpu.memory_space<vmem>>, vector<1x8x1xf32>
    %28 = vector.shape_cast %27 : vector<1x8x1xf32> to vector<8x1xf32>
    %29 = vector.broadcast %28 : vector<8x1xf32> to vector<8x286xf32>
    %30 = vector.broadcast %22 : vector<1x286xf32> to vector<8x286xf32>
    %31 = arith.mulf %29, %30 : vector<8x286xf32>
    %32 = arith.addf %26, %31 : vector<8x286xf32>
    %33 = vector.extract_strided_slice %1 {offsets = [0, 0, 2], sizes = [1, 4, 286], strides = [1, 1, 1]} : vector<1x4x324xf32> to vector<1x4x286xf32>
    %34 = vector.shape_cast %33 : vector<1x4x286xf32> to vector<4x286xf32>
    %35 = vector.extract_strided_slice %3 {offsets = [0, 0, 2], sizes = [1, 1, 286], strides = [1, 1, 1]} : vector<1x1x324xf32> to vector<1x1x286xf32>
    %36 = vector.shape_cast %35 : vector<1x1x286xf32> to vector<1x286xf32>
    %c2 = arith.constant 2 : index
    %c0_17 = arith.constant 0 : index
    %c0_18 = arith.constant 0 : index
    %37 = vector.load %arg2[%c2, %c0_17, %c0_18] : memref<9x8x4xf32, #tpu.memory_space<vmem>>, vector<1x8x4xf32>
    %38 = vector.shape_cast %37 : vector<1x8x4xf32> to vector<8x4xf32>
    %cst_19 = arith.constant dense<0.000000e+00> : vector<8x286xf32>
    %39 = tpu.matmul %38, %34, %cst_19 {dimension_numbers = #tpu.dot_dimension_numbers<[1], [0], [0], [1], [0, 0, 1, 1], [], []>} : vector<8x4xf32>, vector<4x286xf32>, vector<8x286xf32> -> vector<8x286xf32>
    %40 = arith.addf %32, %39 : vector<8x286xf32>
    %c2_20 = arith.constant 2 : index
    %c0_21 = arith.constant 0 : index
    %c0_22 = arith.constant 0 : index
    %41 = vector.load %arg3[%c2_20, %c0_21, %c0_22] : memref<9x8x1xf32, #tpu.memory_space<vmem>>, vector<1x8x1xf32>
    %42 = vector.shape_cast %41 : vector<1x8x1xf32> to vector<8x1xf32>
    %43 = vector.broadcast %42 : vector<8x1xf32> to vector<8x286xf32>
    %44 = vector.broadcast %36 : vector<1x286xf32> to vector<8x286xf32>
    %45 = arith.mulf %43, %44 : vector<8x286xf32>
    %46 = arith.addf %40, %45 : vector<8x286xf32>
    %47 = vector.extract_strided_slice %1 {offsets = [0, 0, 18], sizes = [1, 4, 286], strides = [1, 1, 1]} : vector<1x4x324xf32> to vector<1x4x286xf32>
    %48 = vector.shape_cast %47 : vector<1x4x286xf32> to vector<4x286xf32>
    %49 = vector.extract_strided_slice %3 {offsets = [0, 0, 18], sizes = [1, 1, 286], strides = [1, 1, 1]} : vector<1x1x324xf32> to vector<1x1x286xf32>
    %50 = vector.shape_cast %49 : vector<1x1x286xf32> to vector<1x286xf32>
    %c3 = arith.constant 3 : index
    %c0_23 = arith.constant 0 : index
    %c0_24 = arith.constant 0 : index
    %51 = vector.load %arg2[%c3, %c0_23, %c0_24] : memref<9x8x4xf32, #tpu.memory_space<vmem>>, vector<1x8x4xf32>
    %52 = vector.shape_cast %51 : vector<1x8x4xf32> to vector<8x4xf32>
    %cst_25 = arith.constant dense<0.000000e+00> : vector<8x286xf32>
    %53 = tpu.matmul %52, %48, %cst_25 {dimension_numbers = #tpu.dot_dimension_numbers<[1], [0], [0], [1], [0, 0, 1, 1], [], []>} : vector<8x4xf32>, vector<4x286xf32>, vector<8x286xf32> -> vector<8x286xf32>
    %54 = arith.addf %46, %53 : vector<8x286xf32>
    %c3_26 = arith.constant 3 : index
    %c0_27 = arith.constant 0 : index
    %c0_28 = arith.constant 0 : index
    %55 = vector.load %arg3[%c3_26, %c0_27, %c0_28] : memref<9x8x1xf32, #tpu.memory_space<vmem>>, vector<1x8x1xf32>
    %56 = vector.shape_cast %55 : vector<1x8x1xf32> to vector<8x1xf32>
    %57 = vector.broadcast %56 : vector<8x1xf32> to vector<8x286xf32>
    %58 = vector.broadcast %50 : vector<1x286xf32> to vector<8x286xf32>
    %59 = arith.mulf %57, %58 : vector<8x286xf32>
    %60 = arith.addf %54, %59 : vector<8x286xf32>
    %61 = vector.extract_strided_slice %1 {offsets = [0, 0, 19], sizes = [1, 4, 286], strides = [1, 1, 1]} : vector<1x4x324xf32> to vector<1x4x286xf32>
    %62 = vector.shape_cast %61 : vector<1x4x286xf32> to vector<4x286xf32>
    %63 = vector.extract_strided_slice %3 {offsets = [0, 0, 19], sizes = [1, 1, 286], strides = [1, 1, 1]} : vector<1x1x324xf32> to vector<1x1x286xf32>
    %64 = vector.shape_cast %63 : vector<1x1x286xf32> to vector<1x286xf32>
    %c4 = arith.constant 4 : index
    %c0_29 = arith.constant 0 : index
    %c0_30 = arith.constant 0 : index
    %65 = vector.load %arg2[%c4, %c0_29, %c0_30] : memref<9x8x4xf32, #tpu.memory_space<vmem>>, vector<1x8x4xf32>
    %66 = vector.shape_cast %65 : vector<1x8x4xf32> to vector<8x4xf32>
    %cst_31 = arith.constant dense<0.000000e+00> : vector<8x286xf32>
    %67 = tpu.matmul %66, %62, %cst_31 {dimension_numbers = #tpu.dot_dimension_numbers<[1], [0], [0], [1], [0, 0, 1, 1], [], []>} : vector<8x4xf32>, vector<4x286xf32>, vector<8x286xf32> -> vector<8x286xf32>
    %68 = arith.addf %60, %67 : vector<8x286xf32>
    %c4_32 = arith.constant 4 : index
    %c0_33 = arith.constant 0 : index
    %c0_34 = arith.constant 0 : index
    %69 = vector.load %arg3[%c4_32, %c0_33, %c0_34] : memref<9x8x1xf32, #tpu.memory_space<vmem>>, vector<1x8x1xf32>
    %70 = vector.shape_cast %69 : vector<1x8x1xf32> to vector<8x1xf32>
    %71 = vector.broadcast %70 : vector<8x1xf32> to vector<8x286xf32>
    %72 = vector.broadcast %64 : vector<1x286xf32> to vector<8x286xf32>
    %73 = arith.mulf %71, %72 : vector<8x286xf32>
    %74 = arith.addf %68, %73 : vector<8x286xf32>
    %75 = vector.extract_strided_slice %1 {offsets = [0, 0, 20], sizes = [1, 4, 286], strides = [1, 1, 1]} : vector<1x4x324xf32> to vector<1x4x286xf32>
    %76 = vector.shape_cast %75 : vector<1x4x286xf32> to vector<4x286xf32>
    %77 = vector.extract_strided_slice %3 {offsets = [0, 0, 20], sizes = [1, 1, 286], strides = [1, 1, 1]} : vector<1x1x324xf32> to vector<1x1x286xf32>
    %78 = vector.shape_cast %77 : vector<1x1x286xf32> to vector<1x286xf32>
    %c5 = arith.constant 5 : index
    %c0_35 = arith.constant 0 : index
    %c0_36 = arith.constant 0 : index
    %79 = vector.load %arg2[%c5, %c0_35, %c0_36] : memref<9x8x4xf32, #tpu.memory_space<vmem>>, vector<1x8x4xf32>
    %80 = vector.shape_cast %79 : vector<1x8x4xf32> to vector<8x4xf32>
    %cst_37 = arith.constant dense<0.000000e+00> : vector<8x286xf32>
    %81 = tpu.matmul %80, %76, %cst_37 {dimension_numbers = #tpu.dot_dimension_numbers<[1], [0], [0], [1], [0, 0, 1, 1], [], []>} : vector<8x4xf32>, vector<4x286xf32>, vector<8x286xf32> -> vector<8x286xf32>
    %82 = arith.addf %74, %81 : vector<8x286xf32>
    %c5_38 = arith.constant 5 : index
    %c0_39 = arith.constant 0 : index
    %c0_40 = arith.constant 0 : index
    %83 = vector.load %arg3[%c5_38, %c0_39, %c0_40] : memref<9x8x1xf32, #tpu.memory_space<vmem>>, vector<1x8x1xf32>
    %84 = vector.shape_cast %83 : vector<1x8x1xf32> to vector<8x1xf32>
    %85 = vector.broadcast %84 : vector<8x1xf32> to vector<8x286xf32>
    %86 = vector.broadcast %78 : vector<1x286xf32> to vector<8x286xf32>
    %87 = arith.mulf %85, %86 : vector<8x286xf32>
    %88 = arith.addf %82, %87 : vector<8x286xf32>
    %89 = vector.extract_strided_slice %1 {offsets = [0, 0, 36], sizes = [1, 4, 286], strides = [1, 1, 1]} : vector<1x4x324xf32> to vector<1x4x286xf32>
    %90 = vector.shape_cast %89 : vector<1x4x286xf32> to vector<4x286xf32>
    %91 = vector.extract_strided_slice %3 {offsets = [0, 0, 36], sizes = [1, 1, 286], strides = [1, 1, 1]} : vector<1x1x324xf32> to vector<1x1x286xf32>
    %92 = vector.shape_cast %91 : vector<1x1x286xf32> to vector<1x286xf32>
    %c6 = arith.constant 6 : index
    %c0_41 = arith.constant 0 : index
    %c0_42 = arith.constant 0 : index
    %93 = vector.load %arg2[%c6, %c0_41, %c0_42] : memref<9x8x4xf32, #tpu.memory_space<vmem>>, vector<1x8x4xf32>
    %94 = vector.shape_cast %93 : vector<1x8x4xf32> to vector<8x4xf32>
    %cst_43 = arith.constant dense<0.000000e+00> : vector<8x286xf32>
    %95 = tpu.matmul %94, %90, %cst_43 {dimension_numbers = #tpu.dot_dimension_numbers<[1], [0], [0], [1], [0, 0, 1, 1], [], []>} : vector<8x4xf32>, vector<4x286xf32>, vector<8x286xf32> -> vector<8x286xf32>
    %96 = arith.addf %88, %95 : vector<8x286xf32>
    %c6_44 = arith.constant 6 : index
    %c0_45 = arith.constant 0 : index
    %c0_46 = arith.constant 0 : index
    %97 = vector.load %arg3[%c6_44, %c0_45, %c0_46] : memref<9x8x1xf32, #tpu.memory_space<vmem>>, vector<1x8x1xf32>
    %98 = vector.shape_cast %97 : vector<1x8x1xf32> to vector<8x1xf32>
    %99 = vector.broadcast %98 : vector<8x1xf32> to vector<8x286xf32>
    %100 = vector.broadcast %92 : vector<1x286xf32> to vector<8x286xf32>
    %101 = arith.mulf %99, %100 : vector<8x286xf32>
    %102 = arith.addf %96, %101 : vector<8x286xf32>
    %103 = vector.extract_strided_slice %1 {offsets = [0, 0, 37], sizes = [1, 4, 286], strides = [1, 1, 1]} : vector<1x4x324xf32> to vector<1x4x286xf32>
    %104 = vector.shape_cast %103 : vector<1x4x286xf32> to vector<4x286xf32>
    %105 = vector.extract_strided_slice %3 {offsets = [0, 0, 37], sizes = [1, 1, 286], strides = [1, 1, 1]} : vector<1x1x324xf32> to vector<1x1x286xf32>
    %106 = vector.shape_cast %105 : vector<1x1x286xf32> to vector<1x286xf32>
    %c7 = arith.constant 7 : index
    %c0_47 = arith.constant 0 : index
    %c0_48 = arith.constant 0 : index
    %107 = vector.load %arg2[%c7, %c0_47, %c0_48] : memref<9x8x4xf32, #tpu.memory_space<vmem>>, vector<1x8x4xf32>
    %108 = vector.shape_cast %107 : vector<1x8x4xf32> to vector<8x4xf32>
    %cst_49 = arith.constant dense<0.000000e+00> : vector<8x286xf32>
    %109 = tpu.matmul %108, %104, %cst_49 {dimension_numbers = #tpu.dot_dimension_numbers<[1], [0], [0], [1], [0, 0, 1, 1], [], []>} : vector<8x4xf32>, vector<4x286xf32>, vector<8x286xf32> -> vector<8x286xf32>
    %110 = arith.addf %102, %109 : vector<8x286xf32>
    %c7_50 = arith.constant 7 : index
    %c0_51 = arith.constant 0 : index
    %c0_52 = arith.constant 0 : index
    %111 = vector.load %arg3[%c7_50, %c0_51, %c0_52] : memref<9x8x1xf32, #tpu.memory_space<vmem>>, vector<1x8x1xf32>
    %112 = vector.shape_cast %111 : vector<1x8x1xf32> to vector<8x1xf32>
    %113 = vector.broadcast %112 : vector<8x1xf32> to vector<8x286xf32>
    %114 = vector.broadcast %106 : vector<1x286xf32> to vector<8x286xf32>
    %115 = arith.mulf %113, %114 : vector<8x286xf32>
    %116 = arith.addf %110, %115 : vector<8x286xf32>
    %117 = vector.extract_strided_slice %1 {offsets = [0, 0, 38], sizes = [1, 4, 286], strides = [1, 1, 1]} : vector<1x4x324xf32> to vector<1x4x286xf32>
    %118 = vector.shape_cast %117 : vector<1x4x286xf32> to vector<4x286xf32>
    %119 = vector.extract_strided_slice %3 {offsets = [0, 0, 38], sizes = [1, 1, 286], strides = [1, 1, 1]} : vector<1x1x324xf32> to vector<1x1x286xf32>
    %120 = vector.shape_cast %119 : vector<1x1x286xf32> to vector<1x286xf32>
    %c8 = arith.constant 8 : index
    %c0_53 = arith.constant 0 : index
    %c0_54 = arith.constant 0 : index
    %121 = vector.load %arg2[%c8, %c0_53, %c0_54] : memref<9x8x4xf32, #tpu.memory_space<vmem>>, vector<1x8x4xf32>
    %122 = vector.shape_cast %121 : vector<1x8x4xf32> to vector<8x4xf32>
    %cst_55 = arith.constant dense<0.000000e+00> : vector<8x286xf32>
    %123 = tpu.matmul %122, %118, %cst_55 {dimension_numbers = #tpu.dot_dimension_numbers<[1], [0], [0], [1], [0, 0, 1, 1], [], []>} : vector<8x4xf32>, vector<4x286xf32>, vector<8x286xf32> -> vector<8x286xf32>
    %124 = arith.addf %116, %123 : vector<8x286xf32>
    %c8_56 = arith.constant 8 : index
    %c0_57 = arith.constant 0 : index
    %c0_58 = arith.constant 0 : index
    %125 = vector.load %arg3[%c8_56, %c0_57, %c0_58] : memref<9x8x1xf32, #tpu.memory_space<vmem>>, vector<1x8x1xf32>
    %126 = vector.shape_cast %125 : vector<1x8x1xf32> to vector<8x1xf32>
    %127 = vector.broadcast %126 : vector<8x1xf32> to vector<8x286xf32>
    %128 = vector.broadcast %120 : vector<1x286xf32> to vector<8x286xf32>
    %129 = arith.mulf %127, %128 : vector<8x286xf32>
    %130 = arith.addf %124, %129 : vector<8x286xf32>
    %c0_59 = arith.constant 0 : index
    %c0_60 = arith.constant 0 : index
    %131 = vector.load %arg4[%c0_59, %c0_60] : memref<8x1xf32, #tpu.memory_space<vmem>>, vector<8x1xf32>
    %132 = vector.broadcast %131 : vector<8x1xf32> to vector<8x286xf32>
    %133 = arith.addf %130, %132 : vector<8x286xf32>
    %134 = arith.negf %133 : vector<8x286xf32>
    %135 = math.exp %134 : vector<8x286xf32>
    %cst_61 = arith.constant 1.000000e+00 : f32
    %136 = vector.broadcast %cst_61 : f32 to vector<8x286xf32>
    %137 = arith.addf %136, %135 : vector<8x286xf32>
    %138 = arith.divf %136, %137 : vector<8x286xf32>
    %139 = arith.mulf %138, %133 : vector<8x286xf32>
    %c0_62 = arith.constant 0 : index
    %c0_63 = arith.constant 0 : index
    %c0_64 = arith.constant 0 : index
    %140 = vector.load %arg5[%c0_62, %c0_63, %c0_64] : memref<1x8x286xf32, #tpu.memory_space<vmem>>, vector<1x8x286xf32>
    %141 = vector.shape_cast %140 : vector<1x8x286xf32> to vector<8x286xf32>
    %142 = vector.shape_cast %139 : vector<8x286xf32> to vector<1x8x286xf32>
    tpu.vector_store %arg5[%c0_62, %c0_63, %c0_64], %142 {strides = array<i32>} : memref<1x8x286xf32, #tpu.memory_space<vmem>>, vector<1x8x286xf32>,
    return
  }
  func.func @transform_0(%arg0: i32) -> (i32, i32, i32, i32) {
    %c0_i32 = arith.constant 0 : i32
    %c0_i32_0 = arith.constant 0 : i32
    %c0_i32_1 = arith.constant 0 : i32
    %c0_i32_2 = arith.constant 0 : i32
    return %arg0, %c0_i32, %c0_i32_0, %c0_i32_1 : i32, i32, i32, i32
  }
  func.func @transform_1(%arg0: i32) -> (i32, i32, i32) {
    %c0_i32 = arith.constant 0 : i32
    %c0_i32_0 = arith.constant 0 : i32
    %c0_i32_1 = arith.constant 0 : i32
    %c0_i32_2 = arith.constant 0 : i32
    return %c0_i32, %c0_i32_0, %c0_i32_1 : i32, i32, i32
  }
  func.func @transform_2(%arg0: i32) -> (i32, i32, i32) {
    %c0_i32 = arith.constant 0 : i32
    %c0_i32_0 = arith.constant 0 : i32
    %c0_i32_1 = arith.constant 0 : i32
    %c0_i32_2 = arith.constant 0 : i32
    return %c0_i32, %c0_i32_0, %c0_i32_1 : i32, i32, i32
  }
  func.func @transform_3(%arg0: i32) -> (i32, i32) {
    %c0_i32 = arith.constant 0 : i32
    %c0_i32_0 = arith.constant 0 : i32
    %c0_i32_1 = arith.constant 0 : i32
    return %c0_i32, %c0_i32_0 : i32, i32
  }
  func.func @transform_4(%arg0: i32) -> (i32, i32, i32) {
    %c0_i32 = arith.constant 0 : i32
    %c0_i32_0 = arith.constant 0 : i32
    %c0_i32_1 = arith.constant 0 : i32
    return %arg0, %c0_i32, %c0_i32_0 : i32, i32, i32
  }
}

</mosaic_0001>

<bundles_post_ra>
// kernel: spatial_attention_forward.1
= control target key start
LH: loop header
LB: loop body
LE: loop exit
PB: predicated region body
PF: predicated region fallthrough
CT: control target
= control target key end

     0   :  { %s2221_s15 = smov 0   ;;  %s2527_s0 = inlined_call_operand.vmem [shape: f32[8,1,4,324], index: 0, kind: input, shape index: {}]   ;;  %s2528_s1 = inlined_call_operand.vmem [shape: f32[9,8,4], index: 1, kind: input, shape index: {}]   ;;  %s2529_s2 = inlined_call_operand.vmem [shape: f32[9,8,1], index: 2, kind: input, shape index: {}]   ;;  %s2530_s3 = inlined_call_operand.vmem [shape: f32[8,1], index: 3, kind: input, shape index: {}]   ;;  %s2531_s4 = inlined_call_operand.vmem [shape: f32[8,8,286], index: 4, kind: output, shape index: {}]  }
   0x1 LB: > { %s2005_s16 = sadd.s32 4294967295, %s2183_s15   ;;  %p2009_p0 = scmp.ge.s32.totalorder %s2183_s15, 1  ;;  %s2183_s15 = sphi %s2221_s15, %s14_s15  }
   0x2   : > { %p162_p1 = scmp.lt.s32.totalorder %s2183_s15, 9 }
   0x4   : > { %p163_p2 = pnand %p2009_p0, %p162_p1 }
   0x5   : > { %p188_p3 = scmp.lt.s32.totalorder (!%p163_p2), %s2005_s16, 7  ;;  %s2188_s21 = smov (!%p163_p2), 127  }
   0x6   : > { %166 = sbr.rel (%p163_p2) target bundleno = 414 (0x19e), region = 36  ;;  %s2189_s24 = smov (!%p163_p2), 126  }
   0x7   : > { %s2190_s25 = smov (!%p163_p2), 110   ;;  %s2191_s26 = smov (!%p163_p2), 109  }
   0x8   : > { %s2192_s27 = smov (!%p163_p2), 108   ;;  %s2193_s28 = smov (!%p163_p2), 92  }
   0x9   : > { %s2194_s29 = smov (!%p163_p2), 91   ;;  %s2195_s30 = smov (!%p163_p2), 90  }
   0xb   : > { %v2185_v0 = vmov 0.0   ;;  %s2533_s16 = smov (!%p188_p3, %s2005_s16), 7  ;;  %vm2186_vm0 = vmmov 0   ;;  %v2187_v1 = vmov 0   ;;  %vm204_vm1 = vcmask 1043456   ;;  %v227_v5 = vld [vmem:[%s2528_s1] sm:$0xff] }
   0xc   : > { %311 = vmatprep.mubr.f32.mxu0 %v2185_v0  ;;  %2096 = vmatprep.subr.mxu1 %v2185_v0  ;;  %s2141_s17 = smul.u32 12, %s2533_s16  ;;  %vm237_vm2 = vcmask 31744   ;;  %v2023_v6 = vld [vmem:[%s2529_s2 + $0x8] sm:$0xff]  ;;  %v2030_v7 = vld [vmem:[%s2529_s2 + $0x10] sm:$0xff]  ;;  %v2037_v8 = vld [vmem:[%s2529_s2 + $0x18] sm:$0xff]  ;;  %vm396_vm3 = vcmask 1039360  }
   0xd   : > { %2098 = vmatprep.mubr.msk.f32.mxu1 %vm2186_vm0, %v2185_v0  ;;  %2162 = vset.pattern.permute.xlu0 %v2187_v1  ;;  %v2044_v9 = vld [vmem:[%s2529_s2 + $0x20] sm:$0xff]  ;;  %v2051_v10 = vld [vmem:[%s2529_s2 + $0x28] sm:$0xff]  ;;  %v2058_v11 = vld [vmem:[%s2529_s2 + $0x30] sm:$0xff]  ;;  %vm587_vm4 = vcmask 1031168   ;;  %vm778_vm5 = vcmask 900096   ;;  %vm969_vm6 = vcmask 891904  }
   0xe   : > { %2163 = vset.pattern.permute.xlu1 %v2187_v1  ;;  %s192_s20 = scalar_lea.vmem %s2527_s0, %s2141_s17  ;;  %v2065_v12 = vld [vmem:[%s2529_s2 + $0x38] sm:$0xff]  ;;  %v2072_v13 = vld [vmem:[%s2529_s2 + $0x40] sm:$0xff]  ;;  %v2017_v16 = vld [vmem:[%s2528_s1 + $0x8] sm:$0xff]  ;;  %vm1160_vm7 = vcmask 883712   ;;  %vm1351_vm8 = vcmask 752640   ;;  %vm219_vm9 = vcmask 551936  }
   0xf   : > { %v2239_v2 = vld [vmem:[%s192_s20 + $0x8] sm:$0xf]  ;;  %v2241_v3 = vld [vmem:[%s192_s20] sm:$0xff]  ;;  %v2024_v19 = vld [vmem:[%s2528_s1 + $0x10] sm:$0xff]  ;;  %vm1542_vm10 = vcmask 744448   ;;  %vm1733_vm11 = vcmask 736256  }
  0x10   : > { %394 = vrot.lane.b32.xlu0 %v2239_v2, %s2188_s21  ;;  %390 = vrot.lane.b32.xlu1 %v2241_v3, %s2188_s21  ;;  %v2249_v4 = vcombine.high %v2241_v3, %v2241_v3  ;;  %v228_v14 = vld [vmem:[%s2529_s2] sm:$0xff]  ;;  %v2031_v27 = vld [vmem:[%s2528_s1 + $0x18] sm:$0xff]  ;;  %v205_v48 = vsel %vm204_vm1, %v2241_v3, -inf  ;;  %v220_v54 = vsel %vm219_vm9, %v2239_v2, -inf  ;;  %vm1948_vm12 = vcmask 244736  }
  0x11   : > { %2097 = vmatpush3.msk.msra.mxu1 %vm204_vm1, %v2239_v2  ;;  %v1916_v15 = vld [vmem:[%s2530_s3] sm:$0xff]  ;;  %v2045_v40 = vld [vmem:[%s2528_s1 + $0x28] sm:$0xff]  ;;  %v2052_v47 = vld [vmem:[%s2528_s1 + $0x30] sm:$0xff]  ;;  %v206_v55 = vrot.slane %v205_v48, 4  ;;  %v221_v60 = vrot.slane %v220_v54, 4 }
  0x12   : > { %2012 = vmatprep.subr.msk.mxu0 %vm204_vm1, %v2249_v4  ;;  %2099 = vmatmul.mubr.msk.f32.vlgmr.msra.gmra.mxu1 %vm237_vm2, %v227_v5  ;;  %v2038_v35 = vld [vmem:[%s2528_s1 + $0x20] sm:$0xff]  ;;  %v212_v49 = vsel %vm204_vm1, %v2249_v4, -inf  ;;  %v2059_v57 = vld [vmem:[%s2528_s1 + $0x38] sm:$0xff] }
  0x13   : > { %2013 = vmatpush1.msk.msra.mxu0 %vm204_vm1, %v2241_v3  ;;  %2101 = vmatprep.subr.mxu1 %v2185_v0  ;;  %v213_v56 = vrot.slane %v212_v49, 4  ;;  %v207_v62 = vmax.f32 %v205_v48, %v206_v55 }
  0x14   : > { %585 = vrot.lane.b32.xlu0 %v2239_v2, %s2189_s24  ;;  %581 = vrot.lane.b32.xlu1 %v2241_v3, %s2189_s24 }
  0x15   : > { %2014 = vmatmul.mubr.msk.f32.vlgmr.msra.gmra.mxu0 %vm237_vm2, %v227_v5  ;;  %2103 = vmatprep.mubr.msk.f32.mxu1 %vm2186_vm0, %v2185_v0  ;;  %v214_v63 = vmax.f32 %v212_v49, %v213_v56  ;;  %v208_v5 = vrot.slane %v207_v62, 2 }
  0x16   : > { %472 = vmatprep.mubr.f32.mxu0 %v2185_v0 }
  0x18   : > { %583 = vrot.lane.b32.xlu1 %v2249_v4, %s2189_s24  ;;  %392 = vrot.lane.b32.xlu0 %v2249_v4, %s2188_s21 }
  0x1c   : > { %776 = vrot.lane.b32.xlu1 %v2239_v2, %s2190_s25  ;;  %774 = vrot.lane.b32.xlu0 %v2249_v4, %s2190_s25 }
  0x20   : > { %965 = vrot.lane.b32.xlu1 %v2249_v4, %s2191_s26  ;;  %772 = vrot.lane.b32.xlu0 %v2241_v3, %s2190_s25 }
  0x24   : > { %963 = vrot.lane.b32.xlu1 %v2241_v3, %s2191_s26  ;;  %967 = vrot.lane.b32.xlu0 %v2239_v2, %s2191_s26 }
  0x28   : > { %1158 = vrot.lane.b32.xlu1 %v2239_v2, %s2192_s27  ;;  %1156 = vrot.lane.b32.xlu0 %v2249_v4, %s2192_s27 }
  0x2c   : > { %1347 = vrot.lane.b32.xlu1 %v2249_v4, %s2193_s28  ;;  %1154 = vrot.lane.b32.xlu0 %v2241_v3, %s2192_s27 }
  0x30   : > { %1345 = vrot.lane.b32.xlu1 %v2241_v3, %s2193_s28  ;;  %1349 = vrot.lane.b32.xlu0 %v2239_v2, %s2193_s28 }
  0x34   : > { %1540 = vrot.lane.b32.xlu1 %v2239_v2, %s2194_s29  ;;  %1538 = vrot.lane.b32.xlu0 %v2249_v4, %s2194_s29 }
  0x38   : > { %1729 = vrot.lane.b32.xlu1 %v2249_v4, %s2195_s30  ;;  %1536 = vrot.lane.b32.xlu0 %v2241_v3, %s2194_s29 }
  0x3c   : > { %1727 = vrot.lane.b32.xlu1 %v2241_v3, %s2195_s30  ;;  %1731 = vrot.lane.b32.xlu0 %v2239_v2, %s2195_s30  ;;  %v222_v3 = vmax.f32 %v220_v54, %v221_v60 }
  0x40   : > { %556 = vperm.xlu0 %2162, %v2023_v6   ;;  %747 = vperm.xlu1 %2163, %v2030_v7   ;;  %v215_v6 = vrot.slane %v214_v63, 2  ;;  %v2066_v7 = vld [vmem:[%s2528_s1 + $0x40] sm:$0xff] }
  0x44   : > { %938 = vperm.xlu1 %2163, %v2037_v8   ;;  %1129 = vperm.xlu0 %2162, %v2044_v9  }
  0x48   : > { %1320 = vperm.xlu1 %2163, %v2051_v10   ;;  %1511 = vperm.xlu0 %2162, %v2058_v11   ;;  %v223_v10 = vrot.slane %v222_v3, 2 }
  0x4c   : > { %1702 = vperm.xlu1 %2163, %v2065_v12   ;;  %1893 = vperm.xlu0 %2162, %v2072_v13   ;;  %v209_v13 = vmax.f32 %v207_v62, %v208_v5 }
  0x50   : > { %231 = vperm.xlu1 %2163, %v228_v14   ;;  %v216_v14 = vmax.f32 %v214_v63, %v215_v6 }
  0x54   : > { %1919 = vperm.xlu1 %2163, %v1916_v15   ;;  %v224_v15 = vmax.f32 %v222_v3, %v223_v10 }
  0x82   : > { %v395_v17 = vpop.permute.xlu0 %394  ;;  %v391_v18 = vpop.permute.xlu1 %390 }
  0x83   : > { %2102 = vmatpush3.msk.msra.mxu1 %vm204_vm1, %v395_v17 }
  0x84   : > { %2104 = vmatmul.mubr.msk.f32.vlgmr.msra.gmra.mxu1 %vm237_vm2, %v2017_v16  ;;  %2106 = vmatprep.subr.mxu1 %v2185_v0 }
  0x85   : > { %2108 = vmatprep.mubr.msk.f32.mxu1 %vm2186_vm0, %v2185_v0 }
  0x86   : > { %v586_v20 = vpop.permute.xlu0 %585  ;;  %v582_v21 = vpop.permute.xlu1 %581 }
  0x87   : > { %2107 = vmatpush3.msk.msra.mxu1 %vm204_vm1, %v586_v20 }
  0x88   : > { %2109 = vmatmul.mubr.msk.f32.vlgmr.msra.gmra.mxu1 %vm237_vm2, %v2024_v19  ;;  %2111 = vmatprep.subr.mxu1 %v2185_v0 }
  0x89   : > { %2113 = vmatprep.mubr.msk.f32.mxu1 %vm2186_vm0, %v2185_v0 }
  0x8a   : > { %v584_v22 = vpop.permute.xlu1 %583  ;;  %v393_v23 = vpop.permute.xlu0 %392 }
  0x8b   : > { %v397_v24 = vsel %vm396_vm3, %v391_v18, %v393_v23  ;;  %v398_v25 = vsel %vm396_vm3, %v393_v23, %v395_v17  ;;  %v589_v26 = vsel %vm587_vm4, %v584_v22, %v586_v20  ;;  %v588_v28 = vsel %vm587_vm4, %v582_v21, %v584_v22 }
  0x8c   : > { %2018 = vmatprep.subr.msk.mxu0 %vm204_vm1, %v398_v25  ;;  %v225_v17 = vrot.slane %v224_v15, 1 }
  0x8d   : > { %2019 = vmatpush1.msk.msra.mxu0 %vm204_vm1, %v397_v24 }
  0x8e   : > { %v777_v29 = vpop.permute.xlu1 %776  ;;  %v775_v30 = vpop.permute.xlu0 %774  ;;  %2020 = vmatmul.mubr.msk.f32.vlgmr.msra.gmra.mxu0 %vm237_vm2, %v2017_v16  ;;  %2025 = vmatprep.subr.msk.mxu0 %vm204_vm1, %v589_v26  ;;  %v210_v16 = vrot.slane %v209_v13, 1  ;;  %v226_v20 = vmax.f32 %v224_v15, %v225_v17 }
  0x8f   : > { %v780_v31 = vsel %vm778_vm5, %v775_v30, %v777_v29  ;;  %2026 = vmatpush1.msk.msra.mxu0 %vm204_vm1, %v588_v28  ;;  %2112 = vmatpush3.msk.msra.mxu1 %vm204_vm1, %v777_v29 }
  0x90   : > { %2032 = vmatprep.subr.msk.mxu0 %vm204_vm1, %v780_v31  ;;  %2114 = vmatmul.mubr.msk.f32.vlgmr.msra.gmra.mxu1 %vm237_vm2, %v2031_v27  ;;  %v2453_v18 = vmax.f32 %v209_v13, %v210_v16 }
  0x91   : > { %663 = vmatprep.mubr.f32.mxu0 %v2185_v0  ;;  %2116 = vmatprep.subr.mxu1 %v2185_v0 }
  0x92   : > { %v966_v32 = vpop.permute.xlu1 %965  ;;  %v773_v33 = vpop.permute.xlu0 %772  ;;  %2027 = vmatmul.mubr.msk.f32.vlgmr.msra.gmra.mxu0 %vm237_vm2, %v2024_v19  ;;  %2118 = vmatprep.mubr.msk.f32.mxu1 %vm2186_vm0, %v2185_v0 }
  0x93   : > { %v779_v34 = vsel %vm778_vm5, %v773_v33, %v775_v30  ;;  %854 = vmatprep.mubr.f32.mxu0 %v2185_v0 }
  0x94   : > { %2033 = vmatpush1.msk.msra.mxu0 %vm204_vm1, %v779_v34 }
  0x96   : > { %v964_v36 = vpop.permute.xlu1 %963  ;;  %v968_v37 = vpop.permute.xlu0 %967  ;;  %2034 = vmatmul.mubr.msk.f32.vlgmr.msra.gmra.mxu0 %vm237_vm2, %v2031_v27 }
  0x97   : > { %v970_v38 = vsel %vm969_vm6, %v964_v36, %v966_v32  ;;  %v971_v39 = vsel %vm969_vm6, %v966_v32, %v968_v37  ;;  %2117 = vmatpush3.msk.msra.mxu1 %vm204_vm1, %v968_v37  ;;  %1045 = vmatprep.mubr.f32.mxu0 %v2185_v0 }
  0x98   : > { %2039 = vmatprep.subr.msk.mxu0 %vm204_vm1, %v971_v39  ;;  %2119 = vmatmul.mubr.msk.f32.vlgmr.msra.gmra.mxu1 %vm237_vm2, %v2038_v35 }
  0x99   : > { %2040 = vmatpush1.msk.msra.mxu0 %vm204_vm1, %v970_v38  ;;  %2121 = vmatprep.subr.mxu1 %v2185_v0 }
  0x9a   : > { %v1159_v41 = vpop.permute.xlu1 %1158  ;;  %v1157_v42 = vpop.permute.xlu0 %1156  ;;  %2041 = vmatmul.mubr.msk.f32.vlgmr.msra.gmra.mxu0 %vm237_vm2, %v2038_v35  ;;  %2123 = vmatprep.mubr.msk.f32.mxu1 %vm2186_vm0, %v2185_v0 }
  0x9b   : > { %v1162_v43 = vsel %vm1160_vm7, %v1157_v42, %v1159_v41  ;;  %2122 = vmatpush3.msk.msra.mxu1 %vm204_vm1, %v1159_v41  ;;  %1236 = vmatprep.mubr.f32.mxu0 %v2185_v0 }
  0x9c   : > { %2046 = vmatprep.subr.msk.mxu0 %vm204_vm1, %v1162_v43  ;;  %2124 = vmatmul.mubr.msk.f32.vlgmr.msra.gmra.mxu1 %vm237_vm2, %v2045_v40 }
  0x9d   : > { %2126 = vmatprep.subr.mxu1 %v2185_v0  ;;  %2128 = vmatprep.mubr.msk.f32.mxu1 %vm2186_vm0, %v2185_v0 }
  0x9e   : > { %v1348_v44 = vpop.permute.xlu1 %1347  ;;  %v1155_v45 = vpop.permute.xlu0 %1154 }
  0x9f   : > { %v1161_v46 = vsel %vm1160_vm7, %v1155_v45, %v1157_v42 }
  0xa0   : > { %2047 = vmatpush1.msk.msra.mxu0 %vm204_vm1, %v1161_v46 }
  0xa1   : > { %2048 = vmatmul.mubr.msk.f32.vlgmr.msra.gmra.mxu0 %vm237_vm2, %v2045_v40 }
  0xa2   : > { %v1346_v50 = vpop.permute.xlu1 %1345  ;;  %v1350_v51 = vpop.permute.xlu0 %1349  ;;  %1427 = vmatprep.mubr.f32.mxu0 %v2185_v0 }
  0xa3   : > { %v1352_v52 = vsel %vm1351_vm8, %v1346_v50, %v1348_v44  ;;  %v1353_v53 = vsel %vm1351_vm8, %v1348_v44, %v1350_v51  ;;  %2127 = vmatpush3.msk.msra.mxu1 %vm204_vm1, %v1350_v51 }
  0xa4   : > { %2053 = vmatprep.subr.msk.mxu0 %vm204_vm1, %v1353_v53  ;;  %2129 = vmatmul.mubr.msk.f32.vlgmr.msra.gmra.mxu1 %vm237_vm2, %v2052_v47 }
  0xa5   : > { %2054 = vmatpush1.msk.msra.mxu0 %vm204_vm1, %v1352_v52  ;;  %2131 = vmatprep.subr.mxu1 %v2185_v0 }
  0xa6   : > { %v1541_v58 = vpop.permute.xlu1 %1540  ;;  %v1539_v59 = vpop.permute.xlu0 %1538  ;;  %2055 = vmatmul.mubr.msk.f32.vlgmr.msra.gmra.mxu0 %vm237_vm2, %v2052_v47  ;;  %2133 = vmatprep.mubr.msk.f32.mxu1 %vm2186_vm0, %v2185_v0 }
  0xa7   : > { %v1544_v61 = vsel %vm1542_vm10, %v1539_v59, %v1541_v58  ;;  %2132 = vmatpush3.msk.msra.mxu1 %vm204_vm1, %v1541_v58  ;;  %1618 = vmatprep.mubr.f32.mxu0 %v2185_v0 }
  0xa8   : > { %2060 = vmatprep.subr.msk.mxu0 %vm204_vm1, %v1544_v61  ;;  %2134 = vmatmul.mubr.msk.f32.vlgmr.msra.gmra.mxu1 %vm237_vm2, %v2059_v57 }
  0xa9   : > { %2136 = vmatprep.subr.mxu1 %v2185_v0  ;;  %2138 = vmatprep.mubr.msk.f32.mxu1 %vm2186_vm0, %v2185_v0 }
  0xaa   : > { %v1730_v1 = vpop.permute.xlu1 %1729  ;;  %v1537_v2 = vpop.permute.xlu0 %1536 }
  0xab   : > { %v1543_v4 = vsel %vm1542_vm10, %v1537_v2, %v1539_v59 }
  0xac   : > { %2061 = vmatpush1.msk.msra.mxu0 %vm204_vm1, %v1543_v4 }
  0xad   : > { %2062 = vmatmul.mubr.msk.f32.vlgmr.msra.gmra.mxu0 %vm237_vm2, %v2059_v57 }
  0xae   : > { %v1728_v8 = vpop.permute.xlu1 %1727  ;;  %v1732_v9 = vpop.permute.xlu0 %1731  ;;  %1809 = vmatprep.mubr.f32.mxu0 %v2185_v0  ;;  %v217_v0 = vrot.slane %v216_v14, 1 }
  0xaf   : > { %v1734_v11 = vsel %vm1733_vm11, %v1728_v8, %v1730_v1  ;;  %v1735_v12 = vsel %vm1733_vm11, %v1730_v1, %v1732_v9  ;;  %2137 = vmatpush3.msk.msra.mxu1 %vm204_vm1, %v1732_v9 }
  0xb0   : > { %2067 = vmatprep.subr.msk.mxu0 %vm204_vm1, %v1735_v12  ;;  %2139 = vmatmul.mubr.msk.f32.vlgmr.msra.gmra.mxu1 %vm237_vm2, %v2066_v7  ;;  %v2455_v19 = vmax.f32 %v216_v14, %v217_v0 }
  0xb1   : > { %2068 = vmatpush1.msk.msra.mxu0 %vm204_vm1, %v1734_v11 }
  0xb2   : > { %2069 = vmatmul.mubr.msk.f32.vlgmr.msra.gmra.mxu0 %vm237_vm2, %v2066_v7 }
  0xbb   : > { %v557_v21 = vpop.permute.xlu0 %556  ;;  %v748_v22 = vpop.permute.xlu1 %747 }
  0xbc   : > { %v559_v23 = vmul.f32 %v557_v21, %v2453_v18  ;;  %v560_v24 = vmul.f32 %v557_v21, %v2455_v19  ;;  %v561_v25 = vmul.f32 %v557_v21, %v226_v20  ;;  %v750_v26 = vmul.f32 %v748_v22, %v2453_v18 }
  0xbd   : > { %v751_v28 = vmul.f32 %v748_v22, %v2455_v19  ;;  %v752_v29 = vmul.f32 %v748_v22, %v226_v20 }
  0xbe   : > { %565 = vrot.lane.b32.xlu0 %v559_v23, %s2188_s21  ;;  %567 = vrot.lane.b32.xlu1 %v560_v24, %s2188_s21 }
  0xbf   : > { %v939_v27 = vpop.permute.xlu1 %938  ;;  %v1130_v34 = vpop.permute.xlu0 %1129 }
  0xc0   : > { %v941_v31 = vmul.f32 %v939_v27, %v2453_v18  ;;  %v942_v32 = vmul.f32 %v939_v27, %v2455_v19  ;;  %v943_v35 = vmul.f32 %v939_v27, %v226_v20  ;;  %v1132_v36 = vmul.f32 %v1130_v34, %v2453_v18 }
  0xc1   : > { %v1133_v37 = vmul.f32 %v1130_v34, %v2455_v19  ;;  %v1134_v38 = vmul.f32 %v1130_v34, %v226_v20 }
  0xc2   : > { %569 = vrot.lane.b32.xlu0 %v561_v25, %s2188_s21  ;;  %756 = vrot.lane.b32.xlu1 %v750_v26, %s2189_s24  ;;  %s2142_s21 = smul.u32 24, %s2533_s16 }
  0xc3   : > { %v1321_v30 = vpop.permute.xlu1 %1320  ;;  %v1512_v47 = vpop.permute.xlu0 %1511 }
  0xc4   : > { %v1323_v41 = vmul.f32 %v1321_v30, %v2453_v18  ;;  %v1324_v42 = vmul.f32 %v1321_v30, %v2455_v19  ;;  %v1325_v46 = vmul.f32 %v1321_v30, %v226_v20  ;;  %v1514_v48 = vmul.f32 %v1512_v47, %v2453_v18 }
  0xc5   : > { %v1515_v49 = vmul.f32 %v1512_v47, %v2455_v19  ;;  %v1516_v50 = vmul.f32 %v1512_v47, %v226_v20 }
  0xc6   : > { %758 = vrot.lane.b32.xlu0 %v751_v28, %s2189_s24  ;;  %760 = vrot.lane.b32.xlu1 %v752_v29, %s2189_s24 }
  0xc7   : > { %v1703_v33 = vpop.permute.xlu1 %1702  ;;  %v1894_v53 = vpop.permute.xlu0 %1893 }
  0xc8   : > { %v1705_v51 = vmul.f32 %v1703_v33, %v2453_v18  ;;  %v1706_v52 = vmul.f32 %v1703_v33, %v2455_v19  ;;  %v1707_v54 = vmul.f32 %v1703_v33, %v226_v20  ;;  %v1897_v55 = vmul.f32 %v1894_v53, %v2455_v19 }
  0xc9   : > { %v1896_v56 = vmul.f32 %v1894_v53, %v2453_v18  ;;  %v1898_v57 = vmul.f32 %v1894_v53, %v226_v20 }
  0xca   : > { %947 = vrot.lane.b32.xlu0 %v941_v31, %s2190_s25  ;;  %949 = vrot.lane.b32.xlu1 %v942_v32, %s2190_s25 }
  0xcb   : > { %v232_v39 = vpop.permute.xlu1 %231 }
  0xcc   : > { %v236_v40 = vmul.f32 %v232_v39, %v226_v20  ;;  %v234_v11 = vmul.f32 %v232_v39, %v2453_v18  ;;  %v235_v14 = vmul.f32 %v232_v39, %v2455_v19 }
  0xce   : > { %951 = vrot.lane.b32.xlu0 %v943_v35, %s2190_s25  ;;  %1138 = vrot.lane.b32.xlu1 %v1132_v36, %s2191_s26 }
  0xcf   : > { %v2497_v59 = vpop.permute.xlu1 %1919 }
  0xd2   : > { %1140 = vrot.lane.b32.xlu0 %v1133_v37, %s2191_s26  ;;  %1142 = vrot.lane.b32.xlu1 %v1134_v38, %s2191_s26  ;;  %v384_v43 = vpop.f32.mrf.mxu1  ;;  %s197_s26 = scalar_lea.vmem %s2531_s4, %s2142_s21 }
  0xd3   : > { %v385_v44 = vadd.f32 %v384_v43, %v236_v40 }
  0xd4   : > { %v2100_v45 = vpop.f32.mrf.mxu1 }
  0xd5   : > { %v313_v9 = vpop.f32.mrf.mxu0 }
  0xd6   : > { %1329 = vrot.lane.b32.xlu0 %v1323_v41, %s2192_s27  ;;  %1331 = vrot.lane.b32.xlu1 %v1324_v42, %s2192_s27  ;;  %v314_v16 = vadd.f32 %v313_v9, %v234_v11 }
  0xd7   : > { %v315_v15 = vpop.f32.mrf.mxu0 }
  0xd8   : > { %v316_v22 = vadd.f32 %v315_v15, %v235_v14 }
  0xda   : > { %1333 = vrot.lane.b32.xlu0 %v1325_v46, %s2192_s27  ;;  %1520 = vrot.lane.b32.xlu1 %v1514_v48, %s2193_s28 }
  0xde   : > { %1522 = vrot.lane.b32.xlu0 %v1515_v49, %s2193_s28  ;;  %1524 = vrot.lane.b32.xlu1 %v1516_v50, %s2193_s28 }
  0xe2   : > { %1711 = vrot.lane.b32.xlu0 %v1705_v51, %s2194_s29  ;;  %1713 = vrot.lane.b32.xlu1 %v1706_v52, %s2194_s29 }
  0xe6   : > { %1715 = vrot.lane.b32.xlu0 %v1707_v54, %s2194_s29  ;;  %1904 = vrot.lane.b32.xlu1 %v1897_v55, %s2195_s30 }
  0xea   : > { %1902 = vrot.lane.b32.xlu0 %v1896_v56, %s2195_s30 }
  0xee   : > { %1906 = vrot.lane.b32.xlu0 %v1898_v57, %s2195_s30 }
 0x130   : > { %v566_v58 = vpop.permute.xlu0 %565  ;;  %v568_v61 = vpop.permute.xlu1 %567 }
 0x131   : > { %v571_v24 = vsel %vm396_vm3, %v566_v58, %v568_v61 }
 0x134   : > { %v570_v60 = vpop.permute.xlu0 %569  ;;  %v757_v63 = vpop.permute.xlu1 %756 }
 0x135   : > { %v572_v18 = vsel %vm396_vm3, %v568_v61, %v570_v60 }
 0x138   : > { %v759_v62 = vpop.permute.xlu0 %758  ;;  %v761_v2 = vpop.permute.xlu1 %760 }
 0x139   : > { %v762_v36 = vsel %vm587_vm4, %v757_v63, %v759_v62  ;;  %v763_v40 = vsel %vm587_vm4, %v759_v62, %v761_v2 }
 0x13c   : > { %v948_v1 = vpop.permute.xlu0 %947  ;;  %v950_v7 = vpop.permute.xlu1 %949 }
 0x13d   : > { %v953_v45 = vsel %vm778_vm5, %v948_v1, %v950_v7 }
 0x140   : > { %v952_v3 = vpop.permute.xlu0 %951  ;;  %v1139_v0 = vpop.permute.xlu1 %1138 }
 0x141   : > { %v954_v53 = vsel %vm778_vm5, %v950_v7, %v952_v3 }
 0x144   : > { %v545_v4 = vpop.f32.mrf.mxu1  ;;  %v1141_v8 = vpop.permute.xlu0 %1140 }
 0x145   : > { %v551_v5 = vadd.f32 %v545_v4, %v385_v44  ;;  %v1143_v19 = vpop.permute.xlu1 %1142  ;;  %v1144_v1 = vsel %vm969_vm6, %v1139_v0, %v1141_v8 }
 0x146   : > { %v2105_v6 = vpop.f32.mrf.mxu1  ;;  %v1145_v9 = vsel %vm969_vm6, %v1141_v8, %v1143_v19 }
 0x147   : > { %v578_v12 = vadd.f32 %v570_v60, %v551_v5 }
 0x148   : > { %v736_v10 = vpop.f32.mrf.mxu1  ;;  %v1330_v20 = vpop.permute.xlu0 %1329 }
 0x149   : > { %v742_v17 = vadd.f32 %v736_v10, %v578_v12  ;;  %v1332_v48 = vpop.permute.xlu1 %1331 }
 0x14a   : > { %v2110_v13 = vpop.f32.mrf.mxu1  ;;  %v1335_v7 = vsel %vm1160_vm7, %v1330_v20, %v1332_v48 }
 0x14b   : > { %v769_v28 = vadd.f32 %v761_v2, %v742_v17 }
 0x14c   : > { %v1334_v32 = vpop.permute.xlu0 %1333 }
 0x14d   : > { %v1521_v2 = vpop.permute.xlu1 %1520  ;;  %v1336_v17 = vsel %vm1160_vm7, %v1332_v48, %v1334_v32 }
 0x14e   : > { %v474_v21 = vpop.f32.mrf.mxu0 }
 0x14f   : > { %v549_v23 = vadd.f32 %v474_v21, %v314_v16 }
 0x150   : > { %v476_v25 = vpop.f32.mrf.mxu0  ;;  %v927_v26 = vpop.f32.mrf.mxu1 }
 0x151   : > { %v550_v27 = vadd.f32 %v476_v25, %v316_v22  ;;  %v576_v29 = vadd.f32 %v571_v24, %v549_v23  ;;  %v933_v33 = vadd.f32 %v927_v26, %v769_v28  ;;  %v1523_v49 = vpop.permute.xlu0 %1522  ;;  %v1525_v21 = vpop.permute.xlu1 %1524 }
 0x152   : > { %v665_v30 = vpop.f32.mrf.mxu0  ;;  %v2115_v31 = vpop.f32.mrf.mxu1  ;;  %v1526_v20 = vsel %vm1351_vm8, %v1521_v2, %v1523_v49 }
 0x153   : > { %v740_v34 = vadd.f32 %v665_v30, %v576_v29  ;;  %v577_v35 = vadd.f32 %v572_v18, %v550_v27  ;;  %v960_v44 = vadd.f32 %v952_v3, %v933_v33 }
 0x154   : > { %v667_v37 = vpop.f32.mrf.mxu0 }
 0x155   : > { %v741_v38 = vadd.f32 %v667_v37, %v577_v35  ;;  %v767_v39 = vadd.f32 %v762_v36, %v740_v34  ;;  %v1712_v4 = vpop.permute.xlu0 %1711 }
 0x156   : > { %v856_v41 = vpop.f32.mrf.mxu0 }
 0x157   : > { %v931_v42 = vadd.f32 %v856_v41, %v767_v39  ;;  %v768_v43 = vadd.f32 %v763_v40, %v741_v38 }
 0x158   : > { %v858_v46 = vpop.f32.mrf.mxu0  ;;  %v1118_v47 = vpop.f32.mrf.mxu1 }
 0x159   : > { %v932_v50 = vadd.f32 %v858_v46, %v768_v43  ;;  %v1124_v51 = vadd.f32 %v1118_v47, %v960_v44  ;;  %v958_v52 = vadd.f32 %v953_v45, %v931_v42  ;;  %v1716_v0 = vpop.permute.xlu0 %1715 }
 0x15a   : > { %v1047_v54 = vpop.f32.mrf.mxu0  ;;  %v2120_v55 = vpop.f32.mrf.mxu1 }
 0x15b   : > { %v959_v56 = vadd.f32 %v954_v53, %v932_v50  ;;  %v1151_v57 = vadd.f32 %v1143_v19, %v1124_v51  ;;  %v1122_v58 = vadd.f32 %v1047_v54, %v958_v52  ;;  %v1714_v19 = vpop.permute.xlu1 %1713 }
 0x15c   : > { %v1049_v60 = vpop.f32.mrf.mxu0  ;;  %v1309_v61 = vpop.f32.mrf.mxu1  ;;  %v1717_v37 = vsel %vm1542_vm10, %v1712_v4, %v1714_v19  ;;  %v1718_v43 = vsel %vm1542_vm10, %v1714_v19, %v1716_v0 }
 0x15d   : > { %v1123_v62 = vadd.f32 %v1049_v60, %v959_v56  ;;  %v1315_v5 = vadd.f32 %v1309_v61, %v1151_v57  ;;  %v1149_v6 = vadd.f32 %v1144_v1, %v1122_v58  ;;  %v1903_v30 = vpop.permute.xlu0 %1902 }
 0x15e   : > { %v2125_v63 = vpop.f32.mrf.mxu1 }
 0x15f   : > { %v1150_v3 = vadd.f32 %v1145_v9, %v1123_v62  ;;  %v1342_v13 = vadd.f32 %v1334_v32, %v1315_v5  ;;  %v1527_v32 = vsel %vm1351_vm8, %v1523_v49, %v1525_v21  ;;  %v1905_v50 = vpop.permute.xlu1 %1904 }
 0x160   : > { %v1908_v52 = vsel %vm1733_vm11, %v1903_v30, %v1905_v50 }
 0x161   : > { %v1238_v10 = vpop.f32.mrf.mxu0  ;;  %v1907_v44 = vpop.permute.xlu0 %1906 }
 0x162   : > { %v1313_v11 = vadd.f32 %v1238_v10, %v1149_v6  ;;  %v1909_v57 = vsel %vm1733_vm11, %v1905_v50, %v1907_v44 }
 0x163   : > { %v1240_v12 = vpop.f32.mrf.mxu0 }
 0x164   : > { %v1314_v14 = vadd.f32 %v1240_v12, %v1150_v3  ;;  %v1500_v15 = vpop.f32.mrf.mxu1  ;;  %v1340_v16 = vadd.f32 %v1335_v7, %v1313_v11 }
 0x165   : > { %v1506_v22 = vadd.f32 %v1500_v15, %v1342_v13 }
 0x166   : > { %v1429_v23 = vpop.f32.mrf.mxu0  ;;  %v2130_v24 = vpop.f32.mrf.mxu1  ;;  %v1341_v25 = vadd.f32 %v1336_v17, %v1314_v14 }
 0x167   : > { %v1533_v26 = vadd.f32 %v1525_v21, %v1506_v22  ;;  %v1504_v8 = vadd.f32 %v1429_v23, %v1340_v16 }
 0x168   : > { %v1431_v27 = vpop.f32.mrf.mxu0  ;;  %v1691_v28 = vpop.f32.mrf.mxu1 }
 0x169   : > { %v1505_v29 = vadd.f32 %v1431_v27, %v1341_v25  ;;  %v1697_v31 = vadd.f32 %v1691_v28, %v1533_v26  ;;  %v1531_v33 = vadd.f32 %v1526_v20, %v1504_v8 }
 0x16a   : > { %v2135_v18 = vpop.f32.mrf.mxu1 }
 0x16b   : > { %v1532_v36 = vadd.f32 %v1527_v32, %v1505_v29  ;;  %v1724_v39 = vadd.f32 %v1716_v0, %v1697_v31 }
 0x16d   : > { %v1620_v34 = vpop.f32.mrf.mxu0 }
 0x16e   : > { %v1695_v35 = vadd.f32 %v1620_v34, %v1531_v33 }
 0x16f   : > { %v1622_v38 = vpop.f32.mrf.mxu0 }
 0x170   : > { %v1696_v40 = vadd.f32 %v1622_v38, %v1532_v36  ;;  %v1882_v41 = vpop.f32.mrf.mxu1  ;;  %v1722_v42 = vadd.f32 %v1717_v37, %v1695_v35 }
 0x171   : > { %v1888_v45 = vadd.f32 %v1882_v41, %v1724_v39 }
 0x172   : > { %v1811_v46 = vpop.f32.mrf.mxu0  ;;  %v1723_v47 = vadd.f32 %v1718_v43, %v1696_v40  ;;  %v2140_v48 = vpop.f32.mrf.mxu1 }
 0x173   : > { %v1915_v51 = vadd.f32 %v1907_v44, %v1888_v45  ;;  %v1886_v49 = vadd.f32 %v1811_v46, %v1722_v42 }
 0x174   : > { %v1813_v53 = vpop.f32.mrf.mxu0 }
 0x175   : > { %v1924_v54 = vadd.f32 %v2497_v59, %v1915_v51  ;;  %v1913_v55 = vadd.f32 %v1908_v52, %v1886_v49  ;;  %v1887_v56 = vadd.f32 %v1813_v53, %v1723_v47 }
 0x177   : > { %v2075_v58 = vmul.f32 -1.442695, %v1924_v54  ;;  %v1922_v60 = vadd.f32 %v2497_v59, %v1913_v55  ;;  %v1914_v61 = vadd.f32 %v1909_v57, %v1887_v56 }
 0x179   : > { %2165 = vpow2.f32 %v2075_v58  ;;  %v2073_v62 = vmul.f32 -1.442695, %v1922_v60  ;;  %v1923_v63 = vadd.f32 %v2497_v59, %v1914_v61 }
 0x17b   : > { %2167 = vpow2.f32 %v2073_v62  ;;  %v2074_v1 = vmul.f32 -1.442695, %v1923_v63 }
 0x17d   : > { %2169 = vpow2.f32 %v2074_v1 }
 0x186   : > { %v2166_v2 = vpop.eup %2165 }
 0x187   : > { %v1936_v4 = vadd.f32 1.0, %v2166_v2 }
 0x188   : > { %v2168_v5 = vpop.eup %2167 }
 0x189   : > { %2171 = vrcp.f32 %v1936_v4  ;;  %v1934_v6 = vadd.f32 1.0, %v2168_v5 }
 0x18a   : > { %v2170_v9 = vpop.eup %2169 }
 0x18b   : > { %2173 = vrcp.f32 %v1934_v6  ;;  %v1935_v10 = vadd.f32 1.0, %v2170_v9 }
 0x18d   : > { %2175 = vrcp.f32 %v1935_v10 }
 0x196   : > { %v2172_v11 = vpop.eup %2171 }
 0x197   : > { %v1945_v59 = vmul.f32 %v2172_v11, %v1924_v54 }
 0x198   : > { %v2174_v3 = vpop.eup %2173 }
 0x199   : > { %v1943_v7 = vmul.f32 %v2174_v3, %v1922_v60  ;;  %1949 = vst.msk [vmem:[%s197_s26 + $0x10] sm:$0xff] %vm1948_vm12, %v1945_v59 }
 0x19a   : > { %v2176_v12 = vpop.eup %2175 }
 0x19b   : > { %1946 = vst [vmem:[%s197_s26] sm:$0xff] %v1943_v7  ;;  %v1944_v13 = vmul.f32 %v2176_v12, %v1923_v63 }
 0x19d   : > { %1947 = vst [vmem:[%s197_s26 + $0x8] sm:$0xff] %v1944_v13 }
 0x19e PF: > { %s14_s15 = sadd.s32 1, %s2183_s15  }
 0x19f   : > { %p11_p4 = scmp.ge.s32.totalorder %s14_s15, 10  }
 0x1a1   :  { %13 = sbr.rel (!%p11_p4) target bundleno = 1 (0x1), region = 82 }

</bundles_post_ra>
